<compile_context>
chip_gen: v6e
topology: v6e:2x2x1
jax: 0.10.0
libtpu: 0.0.40
codegen_flags: <defaults>
</compile_context>

<pallas_src>
import functools

import jax
import jax.numpy as jnp
from jax.experimental import pallas as pl
from jax.experimental.pallas import tpu as pltpu


def _round_up(n, m):
    return ((n + m - 1) // m) * m


def _mlp_kernel(x_ref,
                w1_ref, b1_ref,
                w2_ref, b2_ref,
                w3_ref, b3_ref,
                o_ref):
    """Fused MLP: (Linear+foldedBN+ReLU) x2 + final Linear, one batch tile."""
    x = x_ref[...]                                             # bf16 (or f32)

    # Layer 1: Linear (BN folded into w1/b1) -> ReLU.  f32 accumulate + epilogue.
    h1 = jnp.dot(x, w1_ref[...], preferred_element_type=jnp.float32)
    h1 = jnp.maximum(h1 + b1_ref[...], 0.0)

    # Layer 2: Linear (BN folded) -> ReLU.
    h2 = jnp.dot(h1.astype(w2_ref.dtype), w2_ref[...],
                 preferred_element_type=jnp.float32)
    h2 = jnp.maximum(h2 + b2_ref[...], 0.0)

    # Output head.
    out = jnp.dot(h2.astype(w3_ref.dtype), w3_ref[...],
                  preferred_element_type=jnp.float32) + b3_ref[...]
    o_ref[...] = out.astype(o_ref.dtype)


@functools.partial(jax.jit, static_argnames=("block_b", "param_dtype"))
def audio_cnn_forward(x, params, block_b=512, param_dtype=jnp.bfloat16):
    """Run the fused AudioCNN forward pass.

    x: (B, input_dim) float32
    params: dict with transposed weights (in, out), biases (1, H), and
            eval-mode BN scale/shift (1, H) per hidden layer.
    """
    B, D = x.shape
    H1 = params["w1"].shape[1]
    H2 = params["w2"].shape[1]
    C = params["w3"].shape[1]

    # --- Fold eval-mode BatchNorm into the preceding Linear (exact identity).
    w1 = params["w1"] * params["bn1_scale"]
    b1 = params["b1"] * params["bn1_scale"] + params["bn1_shift"]
    w2 = params["w2"] * params["bn2_scale"]
    b2 = params["b2"] * params["bn2_scale"] + params["bn2_shift"]
    w3 = params["w3"]
    b3 = params["b3"]

    # --- Zero-pad hidden widths to multiples of 128 lanes (no-op math:
    # padded columns give relu(0)=0 and meet zero rows in the next weight).
    H1p = _round_up(H1, 128)
    H2p = _round_up(H2, 128)
    if H1p != H1:
        w1 = jnp.pad(w1, ((0, 0), (0, H1p - H1)))
        b1 = jnp.pad(b1, ((0, 0), (0, H1p - H1)))
        w2 = jnp.pad(w2, ((0, H1p - H1), (0, 0)))
    if H2p != H2:
        w2 = jnp.pad(w2, ((0, 0), (0, H2p - H2)))
        b2 = jnp.pad(b2, ((0, 0), (0, H2p - H2)))
        w3 = jnp.pad(w3, ((0, H2p - H2), (0, 0)))

    # --- Narrow matmul operands; keep biases / epilogue in f32.
    x_in = x.astype(param_dtype)
    w1 = w1.astype(param_dtype)
    w2 = w2.astype(param_dtype)
    w3 = w3.astype(param_dtype)
    b1 = b1.astype(jnp.float32)
    b2 = b2.astype(jnp.float32)
    b3 = b3.astype(jnp.float32)
    wbytes = jnp.dtype(param_dtype).itemsize

    # --- Batch tiling: big tile (amortize ~0.35us/step), multiple of 8, and
    # at least 2 grid steps when the batch allows (v7x megacore sharding).
    bb = max(8, min(int(block_b), _round_up(B, 8)))
    bb = _round_up(bb, 8)
    if pl.cdiv(B, bb) < 2 and B > 16:
        bb = max(8, _round_up(pl.cdiv(B, 2), 8))
    grid = (pl.cdiv(B, bb),)

    # --- Explicit VMEM budget (v7x has 64 MiB physical vs 128 on v5e/v6e).
    vmem_est = (2 * bb * D * wbytes                      # double-buffered x tile
                + 2 * bb * C * 4                         # double-buffered out tile
                + 2 * (D * H1p + H1p * H2p + H2p * C) * wbytes   # weights
                + 2 * (H1p + H2p + C) * 4                # biases
                + bb * (H1p + H2p) * 4)                  # f32 intermediates
    vmem_limit = int(min(max(2 * vmem_est, 32 << 20), 64 << 20))

    cost = pl.CostEstimate(
        flops=2 * B * (D * H1p + H1p * H2p + H2p * C),
        transcendentals=0,
        bytes_accessed=(B * D * wbytes
                        + (D * H1p + H1p * H2p + H2p * C) * wbytes
                        + (H1p + H2p + C) * 4
                        + B * C * 4),
    )

    def rep(shape):
        # Constant block index across the grid -> Mosaic keeps it resident
        # (no per-step re-DMA); only x/out stream.
        return pl.BlockSpec(shape, lambda i: (0, 0))

    return pl.pallas_call(
        _mlp_kernel,
        out_shape=jax.ShapeDtypeStruct((B, C), jnp.float32),
        grid_spec=pltpu.PrefetchScalarGridSpec(
            num_scalar_prefetch=0,
            grid=grid,
            in_specs=[
                pl.BlockSpec((bb, D), lambda i: (i, 0)),      # x tile (streamed)
                rep((D, H1p)), rep((1, H1p)),
                rep((H1p, H2p)), rep((1, H2p)),
                rep((H2p, C)), rep((1, C)),
            ],
            out_specs=pl.BlockSpec((bb, C), lambda i: (i, 0)),
        ),
        compiler_params=pltpu.CompilerParams(
            dimension_semantics=("parallel",),
            vmem_limit_bytes=vmem_limit,
        ),
        cost_estimate=cost,
    )(x_in, w1, b1, w2, b2, w3, b3)


def init_params(key, input_dim, hidden_dims=(128, 64), num_classes=1,
                eps=1e-5):
    """Deterministic synthetic parameters matching AudioCNN.__init__ shapes."""
    dims = [input_dim] + list(hidden_dims) + [num_classes]
    keys = jax.random.split(key, 8)
    params = {}

    # Linear layers (stored as (in, out) == PyTorch weight.T).
    for li, (din, dout) in enumerate(zip(dims[:-1], dims[1:]), start=1):
        kw, kb = jax.random.split(keys[li - 1])
        bound = 1.0 / jnp.sqrt(din)
        params[f"w{li}"] = jax.random.uniform(
            kw, (din, dout), jnp.float32, -bound, bound)
        params[f"b{li}"] = jax.random.uniform(
            kb, (1, dout), jnp.float32, -bound, bound)

    # BatchNorm1d (eval mode): fold gamma/beta/running stats into scale/shift.
    for bi, h in enumerate(hidden_dims, start=1):
        kg, kb2, km, kv = jax.random.split(keys[3 + bi], 4)
        gamma = 1.0 + 0.1 * jax.random.normal(kg, (1, h), jnp.float32)
        beta = 0.1 * jax.random.normal(kb2, (1, h), jnp.float32)
        running_mean = 0.1 * jax.random.normal(km, (1, h), jnp.float32)
        running_var = jnp.abs(1.0 + 0.1 * jax.random.normal(kv, (1, h),
                                                            jnp.float32))
        scale = gamma / jnp.sqrt(running_var + eps)
        shift = beta - running_mean * scale
        params[f"bn{bi}_scale"] = scale
        params[f"bn{bi}_shift"] = shift

    return params


def reference_forward(x, params):
    """Plain-JAX f32 reference for correctness checking."""
    h = x @ params["w1"] + params["b1"]
    h = h * params["bn1_scale"] + params["bn1_shift"]
    h = jnp.maximum(h, 0.0)
    h = h @ params["w2"] + params["b2"]
    h = h * params["bn2_scale"] + params["bn2_shift"]
    h = jnp.maximum(h, 0.0)
    return h @ params["w3"] + params["b3"]


if __name__ == "__main__":
    key = jax.random.PRNGKey(0)
    k_x, k_p = jax.random.split(key)

    batch = 32
    input_dim = 32
    hidden_dims = (128, 64)
    num_classes = 1

    x = jax.random.normal(k_x, (batch, input_dim), jnp.float32)
    params = init_params(k_p, input_dim, hidden_dims, num_classes)

    # Default block_b=512 is clamped to the batch and split into 2 grid steps.
    out = audio_cnn_forward(x, params)
    out = jax.block_until_ready(out)

    ref = reference_forward(x, params)
    assert out.shape == (batch, num_classes)
    # bf16 matmul operands with f32 accumulation -> loose tolerance vs f32 ref.
    assert jnp.allclose(out, ref, atol=5e-2, rtol=5e-2)

    print("KERNEL_OK")
</pallas_src>

<mosaic_0001>
module attributes {stable_mosaic.version = 11 : i64} {
  func.func @_mlp_kernel(%arg0: i32, %arg1: memref<16x32xbf16, #tpu.memory_space<vmem>>, %arg2: memref<32x128xbf16, #tpu.memory_space<vmem>>, %arg3: memref<1x128xf32, #tpu.memory_space<vmem>>, %arg4: memref<128x128xbf16, #tpu.memory_space<vmem>>, %arg5: memref<1x128xf32, #tpu.memory_space<vmem>>, %arg6: memref<128x1xbf16, #tpu.memory_space<vmem>>, %arg7: memref<1x1xf32, #tpu.memory_space<vmem>>, %arg8: memref<16x1xf32, #tpu.memory_space<vmem>>) attributes {dimension_semantics = [#tpu.dimension_semantics<parallel>], iteration_bounds = array<i64: 2>, scalar_prefetch = 0 : i64, scratch_operands = 0 : i64, tpu.core_type = #tpu.core_type<tc>, window_params = [{transform_indices = @transform_0, window_bounds = array<i64: 16, 32>}, {pipeline_mode = #tpu.pipeline_mode<synchronous>, transform_indices = @transform_1, window_bounds = array<i64: 32, 128>}, {pipeline_mode = #tpu.pipeline_mode<synchronous>, transform_indices = @transform_2, window_bounds = array<i64: 1, 128>}, {pipeline_mode = #tpu.pipeline_mode<synchronous>, transform_indices = @transform_3, window_bounds = array<i64: 128, 128>}, {pipeline_mode = #tpu.pipeline_mode<synchronous>, transform_indices = @transform_4, window_bounds = array<i64: 1, 128>}, {pipeline_mode = #tpu.pipeline_mode<synchronous>, transform_indices = @transform_5, window_bounds = array<i64: 128, 1>}, {pipeline_mode = #tpu.pipeline_mode<synchronous>, transform_indices = @transform_6, window_bounds = array<i64: 1, 1>}, {transform_indices = @transform_7, window_bounds = array<i64: 16, 1>}]} {
    %c0 = arith.constant 0 : index
    %c0_0 = arith.constant 0 : index
    %0 = vector.load %arg1[%c0, %c0_0] : memref<16x32xbf16, #tpu.memory_space<vmem>>, vector<16x32xbf16>
    %c0_1 = arith.constant 0 : index
    %c0_2 = arith.constant 0 : index
    %1 = vector.load %arg2[%c0_1, %c0_2] : memref<32x128xbf16, #tpu.memory_space<vmem>>, vector<32x128xbf16>
    %cst = arith.constant dense<0.000000e+00> : vector<16x128xf32>
    %2 = tpu.matmul %0, %1, %cst {dimension_numbers = #tpu.dot_dimension_numbers<[1], [0], [0], [1], [0, 0, 1, 1], [], []>} : vector<16x32xbf16>, vector<32x128xbf16>, vector<16x128xf32> -> vector<16x128xf32>
    %c0_3 = arith.constant 0 : index
    %c0_4 = arith.constant 0 : index
    %3 = vector.load %arg3[%c0_3, %c0_4] : memref<1x128xf32, #tpu.memory_space<vmem>>, vector<1x128xf32>
    %4 = vector.broadcast %3 : vector<1x128xf32> to vector<16x128xf32>
    %5 = arith.addf %2, %4 : vector<16x128xf32>
    %cst_5 = arith.constant 0.000000e+00 : f32
    %6 = vector.broadcast %cst_5 : f32 to vector<16x128xf32>
    %7 = arith.maximumf %5, %6 : vector<16x128xf32>
    %8 = arith.truncf %7 : vector<16x128xf32> to vector<16x128xbf16>
    %c0_6 = arith.constant 0 : index
    %c0_7 = arith.constant 0 : index
    %9 = vector.load %arg4[%c0_6, %c0_7] : memref<128x128xbf16, #tpu.memory_space<vmem>>, vector<128x128xbf16>
    %cst_8 = arith.constant dense<0.000000e+00> : vector<16x128xf32>
    %10 = tpu.matmul %8, %9, %cst_8 {dimension_numbers = #tpu.dot_dimension_numbers<[1], [0], [0], [1], [0, 0, 1, 1], [], []>} : vector<16x128xbf16>, vector<128x128xbf16>, vector<16x128xf32> -> vector<16x128xf32>
    %c0_9 = arith.constant 0 : index
    %c0_10 = arith.constant 0 : index
    %11 = vector.load %arg5[%c0_9, %c0_10] : memref<1x128xf32, #tpu.memory_space<vmem>>, vector<1x128xf32>
    %12 = vector.broadcast %11 : vector<1x128xf32> to vector<16x128xf32>
    %13 = arith.addf %10, %12 : vector<16x128xf32>
    %cst_11 = arith.constant 0.000000e+00 : f32
    %14 = vector.broadcast %cst_11 : f32 to vector<16x128xf32>
    %15 = arith.maximumf %13, %14 : vector<16x128xf32>
    %16 = arith.truncf %15 : vector<16x128xf32> to vector<16x128xbf16>
    %c0_12 = arith.constant 0 : index
    %c0_13 = arith.constant 0 : index
    %17 = vector.load %arg6[%c0_12, %c0_13] : memref<128x1xbf16, #tpu.memory_space<vmem>>, vector<128x1xbf16>
    %cst_14 = arith.constant dense<0.000000e+00> : vector<16x1xf32>
    %18 = tpu.matmul %16, %17, %cst_14 {dimension_numbers = #tpu.dot_dimension_numbers<[1], [0], [0], [1], [0, 0, 1, 1], [], []>} : vector<16x128xbf16>, vector<128x1xbf16>, vector<16x1xf32> -> vector<16x1xf32>
    %c0_15 = arith.constant 0 : index
    %c0_16 = arith.constant 0 : index
    %19 = vector.load %arg7[%c0_15, %c0_16] : memref<1x1xf32, #tpu.memory_space<vmem>>, vector<1x1xf32>
    %20 = vector.broadcast %19 : vector<1x1xf32> to vector<16x1xf32>
    %21 = arith.addf %18, %20 : vector<16x1xf32>
    %c0_17 = arith.constant 0 : index
    %c0_18 = arith.constant 0 : index
    %22 = vector.load %arg8[%c0_17, %c0_18] : memref<16x1xf32, #tpu.memory_space<vmem>>, vector<16x1xf32>
    tpu.vector_store %arg8[%c0_17, %c0_18], %21 {strides = array<i32>} : memref<16x1xf32, #tpu.memory_space<vmem>>, vector<16x1xf32>,
    return
  }
  func.func @transform_0(%arg0: i32) -> (i32, i32) {
    %c0_i32 = arith.constant 0 : i32
    %c0_i32_0 = arith.constant 0 : i32
    return %arg0, %c0_i32 : i32, i32
  }
  func.func @transform_1(%arg0: i32) -> (i32, i32) {
    %c0_i32 = arith.constant 0 : i32
    %c0_i32_0 = arith.constant 0 : i32
    %c0_i32_1 = arith.constant 0 : i32
    return %c0_i32, %c0_i32_0 : i32, i32
  }
  func.func @transform_2(%arg0: i32) -> (i32, i32) {
    %c0_i32 = arith.constant 0 : i32
    %c0_i32_0 = arith.constant 0 : i32
    %c0_i32_1 = arith.constant 0 : i32
    return %c0_i32, %c0_i32_0 : i32, i32
  }
  func.func @transform_3(%arg0: i32) -> (i32, i32) {
    %c0_i32 = arith.constant 0 : i32
    %c0_i32_0 = arith.constant 0 : i32
    %c0_i32_1 = arith.constant 0 : i32
    return %c0_i32, %c0_i32_0 : i32, i32
  }
  func.func @transform_4(%arg0: i32) -> (i32, i32) {
    %c0_i32 = arith.constant 0 : i32
    %c0_i32_0 = arith.constant 0 : i32
    %c0_i32_1 = arith.constant 0 : i32
    return %c0_i32, %c0_i32_0 : i32, i32
  }
  func.func @transform_5(%arg0: i32) -> (i32, i32) {
    %c0_i32 = arith.constant 0 : i32
    %c0_i32_0 = arith.constant 0 : i32
    %c0_i32_1 = arith.constant 0 : i32
    return %c0_i32, %c0_i32_0 : i32, i32
  }
  func.func @transform_6(%arg0: i32) -> (i32, i32) {
    %c0_i32 = arith.constant 0 : i32
    %c0_i32_0 = arith.constant 0 : i32
    %c0_i32_1 = arith.constant 0 : i32
    return %c0_i32, %c0_i32_0 : i32, i32
  }
  func.func @transform_7(%arg0: i32) -> (i32, i32) {
    %c0_i32 = arith.constant 0 : i32
    %c0_i32_0 = arith.constant 0 : i32
    return %arg0, %c0_i32 : i32, i32
  }
}

</mosaic_0001>

<bundles_post_ra>
// kernel: audio_cnn_forward.1
= control target key start
LH: loop header
LB: loop body
LE: loop exit
PB: predicated region body
PF: predicated region fallthrough
CT: control target
= control target key end

     0   :  { %s834_s26 = smov 0   ;;  %s939_s0 = inlined_call_operand.vmem [shape: bf16[32,32], index: 0, kind: input, shape index: {}]   ;;  %s940_s1 = inlined_call_operand.vmem [shape: bf16[32,128], index: 1, kind: input, shape index: {}]   ;;  %s941_s2 = inlined_call_operand.vmem [shape: f32[1,128], index: 2, kind: input, shape index: {}]   ;;  %s942_s3 = inlined_call_operand.vmem [shape: bf16[128,128], index: 3, kind: input, shape index: {}]   ;;  %s943_s4 = inlined_call_operand.vmem [shape: f32[1,128], index: 4, kind: input, shape index: {}]   ;;  %s944_s5 = inlined_call_operand.vmem [shape: bf16[128,1], index: 5, kind: input, shape index: {}]   ;;  %s945_s6 = inlined_call_operand.<no memory space> [shape: f32[1,1], index: 6, kind: input, shape index: {}]   ;;  %s946_s7 = inlined_call_operand.vmem [shape: f32[32,1], index: 7, kind: output, shape index: {}]  }
   0x1   :  { %v12_v0 = vstv %s945_s6 }
   0x2   :  { %13 = vst [vmem:[#allocation2] sm:$0x1] %v12_v0 }
   0x3 LB: > { %s649_s27 = sadd.s32 4294967295, %s787_s26   ;;  %p653_p0 = scmp.ge.s32.totalorder %s787_s26, 1  ;;  %s787_s26 = sphi %s834_s26, %s19_s26  }
   0x4   : > { %p240_p1 = scmp.lt.s32.totalorder %s787_s26, 3 }
   0x6   : > { %p241_p2 = pnand %p653_p0, %p240_p1 }
   0x7   : > { %s654_s8 = sshll.u32 (!%p241_p2), %s649_s27, 1 }
   0x8   : > { %244 = sbr.rel (%p241_p2) target bundleno = 628 (0x274), region = 48  ;;  %p273_p3 = scmp.lt.s32.totalorder (!%p241_p2), %s654_s8, 3 }
   0xd   : > { %v762_v1 = vld [vmem:[%s940_s1 + $0x8] sm:$0xff]   ;;  %v789_v2 = vmov 0.0   ;;  %v763_v3 = vld [vmem:[%s940_s1] sm:$0xff]   ;;  %vm790_vm0 = vmmov 0   ;;  %v765_v4 = vld [vmem:[%s942_s3 + $0x38] sm:$0xff]   ;;  %s948_s8 = smov (!%p273_p3, %s654_s8), 3 }
   0xe   : > { %704 = vmatprep.subr.bf16.mxu0 %v789_v2  ;;  %712 = vmatprep.subr.bf16.mxu1 %v789_v2  ;;  %v766_v5 = vld [vmem:[%s942_s3 + $0x30] sm:$0xff]   ;;  %s655_s13 = sshll.u32 %s948_s8, 2  ;;  %vm315_vm1 = vcmask 261120   ;;  %v767_v6 = vld [vmem:[%s942_s3 + $0x28] sm:$0xff]   ;;  %v768_v8 = vld [vmem:[%s942_s3 + $0x20] sm:$0xff]   ;;  %s657_s28 = sshll.u32 %s948_s8, 3 }
   0xf   : > { %705 = vmatpush3.bf16.msra.mxu0 %v762_v1  ;;  %708 = vmatprep.mubr.msk.bf16.mxu0 %vm790_vm0, %v789_v2  ;;  %s276_s18 = scalar_lea.vmem %s939_s0, %s655_s13  ;;  %v769_v9 = vld [vmem:[%s942_s3 + $0x18] sm:$0xff]   ;;  %v770_v10 = vld [vmem:[%s942_s3 + $0x10] sm:$0xff]   ;;  %v771_v11 = vld [vmem:[%s942_s3 + $0x8] sm:$0xff]   ;;  %s282_s30 = scalar_lea.vmem %s946_s7, %s657_s28  ;;  %vm590_vm2 = vcmask 7168  }
  0x10   : > { %706 = vmatprep.subr.bf16.mxu0 %v789_v2  ;;  %728 = vmatprep.mubr.msk.bf16.mxu1 %vm790_vm0, %v789_v2  ;;  %v764_v7 = vld [vmem:[%s276_s18] sm:$0xff]   ;;  %v773_v13 = vld [vmem:[%s944_s5 + $0x38] sm:$0xff]   ;;  %v774_v14 = vld [vmem:[%s944_s5 + $0x30] sm:$0xff]  }
  0x11   : > { %713 = vmatpush3.bf16.msra.mxu1 %v765_v4  ;;  %v772_v12 = vld [vmem:[%s942_s3] sm:$0xff]   ;;  %v775_v15 = vld [vmem:[%s944_s5 + $0x28] sm:$0xff]   ;;  %v777_v17 = vld [vmem:[%s944_s5 + $0x18] sm:$0xff]  }
  0x12   : > { %714 = vmatprep.subr.bf16.mxu1 %v789_v2  ;;  %v776_v16 = vld [vmem:[%s944_s5 + $0x20] sm:$0xff]   ;;  %v778_v28 = vld [vmem:[%s944_s5 + $0x10] sm:$0xff]   ;;  %v779_v29 = vld [vmem:[%s944_s5 + $0x8] sm:$0xff]  }
  0x13   : > { %707 = vmatpush3.bf16.msra.mxu0 %v763_v3  ;;  %v658_v18 = vld [vmem:[%s941_s2] ss:$0 sm:$0xff] }
  0x14   : > { %732 = vmatprep.subr.bf16.mxu0 %v789_v2  ;;  %v780_v30 = vld [vmem:[%s944_s5] sm:$0xff]  }
  0x15   : > { %715 = vmatpush3.bf16.msra.mxu1 %v766_v5  ;;  %v663_v31 = vld [vmem:[%s943_s4] ss:$0 sm:$0xff] }
  0x16   : > { %716 = vmatprep.subr.bf16.mxu1 %v789_v2  ;;  %709 = vmatmul.mubr.msk.bf16.vlgmr.msra.gmra.mxu0 %vm315_vm1, %v764_v7  ;;  %v672_v41 = vld [vmem:[#allocation2] ss:$0 sm:$0xff] }
  0x17   : > { %748 = vmatprep.mubr.msk.bf16.mxu0 %vm790_vm0, %v789_v2  ;;  %733 = vmatpush3.bf16.msra.mxu0 %v773_v13 }
  0x18   : > { %734 = vmatprep.subr.bf16.mxu0 %v789_v2 }
  0x19   : > { %717 = vmatpush3.bf16.msra.mxu1 %v767_v6 }
  0x1a   : > { %718 = vmatprep.subr.bf16.mxu1 %v789_v2 }
  0x1b   : > { %735 = vmatpush3.bf16.msra.mxu0 %v774_v14 }
  0x1c   : > { %736 = vmatprep.subr.bf16.mxu0 %v789_v2 }
  0x1d   : > { %719 = vmatpush3.bf16.msra.mxu1 %v768_v8 }
  0x1e   : > { %720 = vmatprep.subr.bf16.mxu1 %v789_v2 }
  0x1f   : > { %737 = vmatpush3.bf16.msra.mxu0 %v775_v15 }
  0x20   : > { %738 = vmatprep.subr.bf16.mxu0 %v789_v2 }
  0x21   : > { %721 = vmatpush3.bf16.msra.mxu1 %v769_v9 }
  0x22   : > { %722 = vmatprep.subr.bf16.mxu1 %v789_v2 }
  0x23   : > { %739 = vmatpush3.bf16.msra.mxu0 %v776_v16 }
  0x24   : > { %740 = vmatprep.subr.bf16.mxu0 %v789_v2 }
  0x25   : > { %723 = vmatpush3.bf16.msra.mxu1 %v770_v10 }
  0x26   : > { %724 = vmatprep.subr.bf16.mxu1 %v789_v2 }
  0x27   : > { %741 = vmatpush3.bf16.msra.mxu0 %v777_v17 }
  0x28   : > { %742 = vmatprep.subr.bf16.mxu0 %v789_v2 }
  0x29   : > { %725 = vmatpush3.bf16.msra.mxu1 %v771_v11 }
  0x2a   : > { %726 = vmatprep.subr.bf16.mxu1 %v789_v2 }
  0x2b   : > { %743 = vmatpush3.bf16.msra.mxu0 %v778_v28 }
  0x2c   : > { %744 = vmatprep.subr.bf16.mxu0 %v789_v2 }
  0x2d   : > { %727 = vmatpush3.bf16.msra.mxu1 %v772_v12 }
  0x2f   : > { %745 = vmatpush3.bf16.msra.mxu0 %v779_v29 }
  0x30   : > { %746 = vmatprep.subr.bf16.mxu0 %v789_v2 }
  0x33   : > { %747 = vmatpush3.bf16.msra.mxu0 %v780_v30 }
  0xd6   : > { %v353_v19 = vpop.f32.mrf.mxu0 }
  0xd7   : > { %v354_v21 = vadd.f32 %v658_v18, %v353_v19 }
  0xd8   : > { %v710_v20 = vpop.f32.mrf.mxu0 }
  0xd9   : > { %v360_v25 = vmax.f32 %v354_v21, 0.0 }
  0xda   : > { %v356_v22 = vpop.f32.mrf.mxu0 }
  0xdb   : > { %v357_v23 = vadd.f32 %v658_v18, %v356_v22 }
  0xdc   : > { %v711_v24 = vpop.f32.mrf.mxu0 }
  0xdd   : > { %v361_v26 = vmax.f32 %v357_v23, 0.0 }
  0xdf   : > { %v362_v27 = vpack.c.bf16 %v361_v26, %v360_v25 }
  0xe1   : > { %729 = vmatmul.mubr.bf16.vlgmr.msra.gmra.mxu1 %v362_v27 }
 0x1a1   : > { %v468_v32 = vpop.f32.mrf.mxu1 }
 0x1a2   : > { %v469_v34 = vadd.f32 %v663_v31, %v468_v32 }
 0x1a3   : > { %v730_v33 = vpop.f32.mrf.mxu1 }
 0x1a4   : > { %v475_v38 = vmax.f32 %v469_v34, 0.0 }
 0x1a5   : > { %v471_v35 = vpop.f32.mrf.mxu1 }
 0x1a6   : > { %v472_v36 = vadd.f32 %v663_v31, %v471_v35 }
 0x1a7   : > { %v731_v37 = vpop.f32.mrf.mxu1 }
 0x1a8   : > { %v476_v39 = vmax.f32 %v472_v36, 0.0 }
 0x1aa   : > { %v477_v40 = vpack.c.bf16 %v476_v39, %v475_v38 }
 0x1ac   : > { %749 = vmatmul.mubr.bf16.vlgmr.msra.gmra.mxu0 %v477_v40 }
 0x26c   : > { %v583_v42 = vpop.f32.mrf.mxu0 }
 0x26d   : > { %v584_v43 = vadd.f32 %v672_v41, %v583_v42 }
 0x26e   : > { %v750_v44 = vpop.f32.mrf.mxu0 }
 0x26f   : > { %591 = vst.msk [vmem:[%s282_s30] sm:$0xff] %vm590_vm2, %v584_v43 }
 0x270   : > { %v586_v45 = vpop.f32.mrf.mxu0 }
 0x271   : > { %v587_v46 = vadd.f32 %v672_v41, %v586_v45 }
 0x272   : > { %v751_v47 = vpop.f32.mrf.mxu0 }
 0x273   : > { %592 = vst.msk [vmem:[%s282_s30 + $0x8] sm:$0xff] %vm590_vm2, %v587_v46 }
 0x274 PF: > { %s19_s26 = sadd.s32 1, %s787_s26  }
 0x275   : > { %p16_p4 = scmp.ge.s32.totalorder %s19_s26, 4  }
 0x277   :  { %18 = sbr.rel (!%p16_p4) target bundleno = 3 (0x3), region = 78 }

</bundles_post_ra>
